<compile_context>
chip_gen: v5e
topology: v5e:2x2
jax: 0.10.0
libtpu: 0.0.40
codegen_flags: <defaults>
</compile_context>

<pallas_src>
import functools

import jax
import jax.numpy as jnp
from jax.experimental import pallas as pl
from jax.experimental.pallas import tpu as pltpu

_INV_SQRT2 = 0.7071067811865475244


def _projection_head_kernel(x_ref, wp_ref, bp_ref, wf_ref, bf_ref,
                            gamma_ref, beta_ref, o_ref, *, eps, p_real):
    # Grid-invariant params: load + cast once per body (cheap [1, P_pad] rows).
    bp = bp_ref[...].astype(jnp.float32)
    bf = bf_ref[...].astype(jnp.float32)
    gamma = gamma_ref[...].astype(jnp.float32)
    beta = beta_ref[...].astype(jnp.float32)

    # ---- Linear 1: native-dtype operands straight to the MXU, f32 accumulate.
    projected = jnp.dot(x_ref[...], wp_ref[...],
                        preferred_element_type=jnp.float32) + bp

    # ---- GELU (exact erf, matches torch.nn.GELU default), f32 math.
    g = 0.5 * projected * (1.0 + jax.lax.erf(projected * _INV_SQRT2))

    # ---- Linear 2: cast activations down to the weight dtype (no-op for f32,
    # bf16 MXU path for bf16 weights), f32 accumulate.
    h = jnp.dot(g.astype(wf_ref.dtype), wf_ref[...],
                preferred_element_type=jnp.float32) + bf

    # ---- Residual.
    y = h + projected

    # ---- LayerNorm over the *real* (unpadded) feature width.
    # Padded lanes of y are exactly zero (weights/biases zero-padded), so plain
    # row sums are correct for the mean; the variance masks the padded lanes.
    p_pad = y.shape[-1]
    inv_p = jnp.float32(1.0 / p_real)
    mean = jnp.sum(y, axis=-1, keepdims=True) * inv_p
    if p_pad == p_real:
        centered = y - mean
    else:
        lane = jax.lax.broadcasted_iota(jnp.int32, y.shape, 1)
        centered = jnp.where(lane < p_real, y - mean, 0.0)
    var = jnp.sum(centered * centered, axis=-1, keepdims=True) * inv_p
    inv = jax.lax.rsqrt(var + eps)

    # Padded output lanes come out as 0 (gamma/beta padded with 0); sliced away
    # in the wrapper.
    o_ref[...] = (centered * inv * gamma + beta).astype(o_ref.dtype)


def _round_up(n, m):
    return ((n + m - 1) // m) * m


def _choose_tm(B):
    """Sublane-aligned batch tile: whole batch for tiny B, 128-256 rows for big
    batches, and >=2 tiles when possible so v7x's two TensorCores both work."""
    if B <= 8:
        return _round_up(max(B, 1), 8)
    n_tiles = max(2 if B >= 16 else 1, pl.cdiv(B, 256))
    return _round_up(pl.cdiv(B, n_tiles), 8)


def projection_head(x, wp, bp, wf, bf, gamma, beta, *, eps=1e-5, tm=None):
    """x: [B, E]; wp: [P, E]; bp: [P]; wf: [P, P]; bf: [P]; gamma/beta: [P]."""
    B, E = x.shape
    P = wp.shape[0]

    # Lane padding: feature dims up to multiples of 128 -> lane-dense tiles
    # (unmasked vst, full MXU columns). Zero padding keeps the math exact.
    E_pad = _round_up(E, 128)
    P_pad = _round_up(P, 128)

    if tm is None:
        tm = _choose_tm(B)
    tm = min(_round_up(tm, 8), max(_round_up(B, 8), 8))

    # Keep pipelined activations inside scoped VMEM (v7x: 64 MiB physical,
    # ~32 MiB scoped per TensorCore) by capping tm against a budget.
    itemsize = jnp.dtype(x.dtype).itemsize

    def _act_bytes(t):
        io = 2 * t * (E_pad + P_pad) * itemsize   # double-buffered x/out tiles
        scratch = 4 * t * P_pad * 4               # f32 intermediates (upper bound)
        return io + scratch

    act_budget = 24 * 2**20
    while tm > 8 and _act_bytes(tm) > act_budget:
        tm = _round_up(tm // 2, 8)

    B_pad = _round_up(B, tm)

    # Wrapper-side one-time layout prep: zero-pad + pre-transpose so the kernel
    # does plain row-major, lane-dense matmuls.
    x_p = jnp.pad(x, ((0, B_pad - B), (0, E_pad - E)))
    wp_t = jnp.pad(wp, ((0, P_pad - P), (0, E_pad - E))).T      # [E_pad, P_pad]
    wf_t = jnp.pad(wf, ((0, P_pad - P), (0, P_pad - P))).T      # [P_pad, P_pad]
    bp2 = jnp.pad(bp, (0, P_pad - P)).reshape(1, P_pad)
    bf2 = jnp.pad(bf, (0, P_pad - P)).reshape(1, P_pad)
    gamma2 = jnp.pad(gamma, (0, P_pad - P)).reshape(1, P_pad)
    beta2 = jnp.pad(beta, (0, P_pad - P)).reshape(1, P_pad)

    w_itemsize = jnp.dtype(wp.dtype).itemsize
    weight_bytes = (E_pad * P_pad + P_pad * P_pad + 4 * P_pad) * w_itemsize
    est = _act_bytes(tm) + 2 * weight_bytes
    vmem_limit = int(min(64 * 2**20, max(16 * 2**20, 2 * est)))

    grid = (B_pad // tm,)
    kernel = functools.partial(_projection_head_kernel, eps=eps, p_real=P)

    def build_and_run(single_buffer_weights):
        def const_spec(shape):
            # Constant-index residents are only DMA'd once; single-buffer them
            # to reclaim VMEM (matters most on v7x's 64 MiB VMEM).
            if single_buffer_weights:
                return pl.BlockSpec(shape, lambda i: (0, 0),
                                    pipeline_mode=pl.Buffered(1))
            return pl.BlockSpec(shape, lambda i: (0, 0))

        return pl.pallas_call(
            kernel,
            out_shape=jax.ShapeDtypeStruct((B_pad, P_pad), x.dtype),
            grid_spec=pltpu.PrefetchScalarGridSpec(
                num_scalar_prefetch=0,
                grid=grid,
                in_specs=[
                    pl.BlockSpec((tm, E_pad), lambda i: (i, 0)),  # x tile (pipelined)
                    const_spec((E_pad, P_pad)),                   # Wp^T (resident)
                    const_spec((1, P_pad)),                       # bp
                    const_spec((P_pad, P_pad)),                   # Wf^T (resident)
                    const_spec((1, P_pad)),                       # bf
                    const_spec((1, P_pad)),                       # gamma
                    const_spec((1, P_pad)),                       # beta
                ],
                out_specs=pl.BlockSpec((tm, P_pad), lambda i: (i, 0)),
            ),
            compiler_params=pltpu.CompilerParams(
                dimension_semantics=("parallel",),
                vmem_limit_bytes=vmem_limit),
        )(x_p, wp_t, bp2, wf_t, bf2, gamma2, beta2)

    try:
        out = build_and_run(True)
    except Exception:
        # pl.Buffered(1) / pipeline_mode not supported by this jax version:
        # fall back to default double-buffered residents (correctness identical).
        out = build_and_run(False)

    return out[:B, :P]


def projection_head_ref(x, wp, bp, wf, bf, gamma, beta, eps=1e-5):
    """Pure-JAX reference mirroring the PyTorch module."""
    projected = x @ wp.T + bp
    h = jax.nn.gelu(projected, approximate=False)
    h = h @ wf.T + bf
    y = h + projected
    mean = jnp.mean(y, axis=-1, keepdims=True)
    var = jnp.mean((y - mean) ** 2, axis=-1, keepdims=True)
    return (y - mean) * jax.lax.rsqrt(var + eps) * gamma + beta


if __name__ == "__main__":
    # Small shapes consistent with the module: a batch of embeddings.
    B = 8                 # batch
    E = 32                # embedding_dim
    P = 64                # projection_dim

    key = jax.random.PRNGKey(0)
    kx, kwp, kbp, kwf, kbf, kg, kb = jax.random.split(key, 7)

    x = jax.random.normal(kx, (B, E), dtype=jnp.float32)

    # Deterministic synthetic parameters (shapes from the module's __init__).
    wp = jax.random.normal(kwp, (P, E), dtype=jnp.float32) * (1.0 / jnp.sqrt(E))
    bp = jax.random.normal(kbp, (P,), dtype=jnp.float32) * 0.01
    wf = jax.random.normal(kwf, (P, P), dtype=jnp.float32) * (1.0 / jnp.sqrt(P))
    bf = jax.random.normal(kbf, (P,), dtype=jnp.float32) * 0.01
    gamma = 1.0 + 0.1 * jax.random.normal(kg, (P,), dtype=jnp.float32)
    beta = 0.1 * jax.random.normal(kb, (P,), dtype=jnp.float32)

    out = projection_head(x, wp, bp, wf, bf, gamma, beta)
    out = jax.block_until_ready(out)

    ref = projection_head_ref(x, wp, bp, wf, bf, gamma, beta)
    assert out.shape == (B, P)
    assert jnp.allclose(out, ref, atol=1e-4, rtol=1e-4), (
        f"max abs err {jnp.max(jnp.abs(out - ref))}")

    print("KERNEL_OK")
</pallas_src>

<mosaic_0001>
module attributes {stable_mosaic.version = 11 : i64} {
  func.func @_projection_head_kernel(%arg0: i32, %arg1: memref<8x128xf32, #tpu.memory_space<vmem>>, %arg2: memref<128x128xf32, #tpu.memory_space<vmem>>, %arg3: memref<1x128xf32, #tpu.memory_space<vmem>>, %arg4: memref<128x128xf32, #tpu.memory_space<vmem>>, %arg5: memref<1x128xf32, #tpu.memory_space<vmem>>, %arg6: memref<1x128xf32, #tpu.memory_space<vmem>>, %arg7: memref<1x128xf32, #tpu.memory_space<vmem>>, %arg8: memref<8x128xf32, #tpu.memory_space<vmem>>) attributes {dimension_semantics = [#tpu.dimension_semantics<parallel>], iteration_bounds = array<i64: 1>, scalar_prefetch = 0 : i64, scratch_operands = 0 : i64, tpu.core_type = #tpu.core_type<tc>, window_params = [{transform_indices = @transform_0, window_bounds = array<i64: 8, 128>}, {pipeline_mode = #tpu.pipeline_mode<synchronous>, transform_indices = @transform_1, window_bounds = array<i64: 128, 128>}, {pipeline_mode = #tpu.pipeline_mode<synchronous>, transform_indices = @transform_2, window_bounds = array<i64: 1, 128>}, {pipeline_mode = #tpu.pipeline_mode<synchronous>, transform_indices = @transform_3, window_bounds = array<i64: 128, 128>}, {pipeline_mode = #tpu.pipeline_mode<synchronous>, transform_indices = @transform_4, window_bounds = array<i64: 1, 128>}, {pipeline_mode = #tpu.pipeline_mode<synchronous>, transform_indices = @transform_5, window_bounds = array<i64: 1, 128>}, {pipeline_mode = #tpu.pipeline_mode<synchronous>, transform_indices = @transform_6, window_bounds = array<i64: 1, 128>}, {transform_indices = @transform_7, window_bounds = array<i64: 8, 128>}]} {
    %c0 = arith.constant 0 : index
    %c0_0 = arith.constant 0 : index
    %0 = vector.load %arg3[%c0, %c0_0] : memref<1x128xf32, #tpu.memory_space<vmem>>, vector<1x128xf32>
    %c0_1 = arith.constant 0 : index
    %c0_2 = arith.constant 0 : index
    %1 = vector.load %arg5[%c0_1, %c0_2] : memref<1x128xf32, #tpu.memory_space<vmem>>, vector<1x128xf32>
    %c0_3 = arith.constant 0 : index
    %c0_4 = arith.constant 0 : index
    %2 = vector.load %arg6[%c0_3, %c0_4] : memref<1x128xf32, #tpu.memory_space<vmem>>, vector<1x128xf32>
    %c0_5 = arith.constant 0 : index
    %c0_6 = arith.constant 0 : index
    %3 = vector.load %arg7[%c0_5, %c0_6] : memref<1x128xf32, #tpu.memory_space<vmem>>, vector<1x128xf32>
    %c0_7 = arith.constant 0 : index
    %c0_8 = arith.constant 0 : index
    %4 = vector.load %arg1[%c0_7, %c0_8] : memref<8x128xf32, #tpu.memory_space<vmem>>, vector<8x128xf32>
    %c0_9 = arith.constant 0 : index
    %c0_10 = arith.constant 0 : index
    %5 = vector.load %arg2[%c0_9, %c0_10] : memref<128x128xf32, #tpu.memory_space<vmem>>, vector<128x128xf32>
    %cst = arith.constant dense<0.000000e+00> : vector<8x128xf32>
    %6 = tpu.matmul %4, %5, %cst {dimension_numbers = #tpu.dot_dimension_numbers<[1], [0], [0], [1], [0, 0, 1, 1], [], []>} : vector<8x128xf32>, vector<128x128xf32>, vector<8x128xf32> -> vector<8x128xf32>
    %7 = vector.broadcast %0 : vector<1x128xf32> to vector<8x128xf32>
    %8 = arith.addf %6, %7 : vector<8x128xf32>
    %cst_11 = arith.constant 5.000000e-01 : f32
    %9 = vector.broadcast %cst_11 : f32 to vector<8x128xf32>
    %10 = arith.mulf %9, %8 : vector<8x128xf32>
    %cst_12 = arith.constant 0.707106769 : f32
    %11 = vector.broadcast %cst_12 : f32 to vector<8x128xf32>
    %12 = arith.mulf %8, %11 : vector<8x128xf32>
    %13 = math.erf %12 : vector<8x128xf32>
    %cst_13 = arith.constant 1.000000e+00 : f32
    %14 = vector.broadcast %cst_13 : f32 to vector<8x128xf32>
    %15 = arith.addf %14, %13 : vector<8x128xf32>
    %16 = arith.mulf %10, %15 : vector<8x128xf32>
    %c0_14 = arith.constant 0 : index
    %c0_15 = arith.constant 0 : index
    %17 = vector.load %arg4[%c0_14, %c0_15] : memref<128x128xf32, #tpu.memory_space<vmem>>, vector<128x128xf32>
    %cst_16 = arith.constant dense<0.000000e+00> : vector<8x128xf32>
    %18 = tpu.matmul %16, %17, %cst_16 {dimension_numbers = #tpu.dot_dimension_numbers<[1], [0], [0], [1], [0, 0, 1, 1], [], []>} : vector<8x128xf32>, vector<128x128xf32>, vector<8x128xf32> -> vector<8x128xf32>
    %19 = vector.broadcast %1 : vector<1x128xf32> to vector<8x128xf32>
    %20 = arith.addf %18, %19 : vector<8x128xf32>
    %21 = arith.addf %20, %8 : vector<8x128xf32>
    %cst_17 = arith.constant dense<0.000000e+00> : vector<8xf32>
    %22 = vector.multi_reduction <add>, %21, %cst_17 [1] : vector<8x128xf32> to vector<8xf32>
    %23 = vector.shape_cast %22 : vector<8xf32> to vector<8x1xf32>
    %cst_18 = arith.constant 1.562500e-02 : f32
    %24 = vector.broadcast %cst_18 : f32 to vector<8x1xf32>
    %25 = arith.mulf %23, %24 : vector<8x1xf32>
    %26 = tpu.iota {dimensions = array<i32: 1>} : vector<8x128xi32>
    %c64_i32 = arith.constant 64 : i32
    %27 = vector.broadcast %c64_i32 : i32 to vector<8x128xi32>
    %28 = arith.cmpi slt, %26, %27 : vector<8x128xi32>
    %29 = vector.broadcast %25 : vector<8x1xf32> to vector<8x128xf32>
    %30 = arith.subf %21, %29 : vector<8x128xf32>
    %cst_19 = arith.constant 0.000000e+00 : f32
    %31 = vector.broadcast %cst_19 : f32 to vector<8x128xf32>
    %32 = arith.select %28, %30, %31 : vector<8x128xi1>, vector<8x128xf32>
    %33 = arith.mulf %32, %32 : vector<8x128xf32>
    %cst_20 = arith.constant dense<0.000000e+00> : vector<8xf32>
    %34 = vector.multi_reduction <add>, %33, %cst_20 [1] : vector<8x128xf32> to vector<8xf32>
    %35 = vector.shape_cast %34 : vector<8xf32> to vector<8x1xf32>
    %cst_21 = arith.constant 1.562500e-02 : f32
    %36 = vector.broadcast %cst_21 : f32 to vector<8x1xf32>
    %37 = arith.mulf %35, %36 : vector<8x1xf32>
    %cst_22 = arith.constant 9.99999974E-6 : f32
    %38 = vector.broadcast %cst_22 : f32 to vector<8x1xf32>
    %39 = arith.addf %37, %38 : vector<8x1xf32>
    %40 = math.rsqrt %39 : vector<8x1xf32>
    %41 = vector.broadcast %40 : vector<8x1xf32> to vector<8x128xf32>
    %42 = arith.mulf %32, %41 : vector<8x128xf32>
    %43 = vector.broadcast %2 : vector<1x128xf32> to vector<8x128xf32>
    %44 = arith.mulf %42, %43 : vector<8x128xf32>
    %45 = vector.broadcast %3 : vector<1x128xf32> to vector<8x128xf32>
    %46 = arith.addf %44, %45 : vector<8x128xf32>
    %c0_23 = arith.constant 0 : index
    %c0_24 = arith.constant 0 : index
    %47 = vector.load %arg8[%c0_23, %c0_24] : memref<8x128xf32, #tpu.memory_space<vmem>>, vector<8x128xf32>
    tpu.vector_store %arg8[%c0_23, %c0_24], %46 {strides = array<i32>} : memref<8x128xf32, #tpu.memory_space<vmem>>, vector<8x128xf32>,
    return
  }
  func.func @transform_0(%arg0: i32) -> (i32, i32) {
    %c0_i32 = arith.constant 0 : i32
    %c0_i32_0 = arith.constant 0 : i32
    return %arg0, %c0_i32 : i32, i32
  }
  func.func @transform_1(%arg0: i32) -> (i32, i32) {
    %c0_i32 = arith.constant 0 : i32
    %c0_i32_0 = arith.constant 0 : i32
    %c0_i32_1 = arith.constant 0 : i32
    return %c0_i32, %c0_i32_0 : i32, i32
  }
  func.func @transform_2(%arg0: i32) -> (i32, i32) {
    %c0_i32 = arith.constant 0 : i32
    %c0_i32_0 = arith.constant 0 : i32
    %c0_i32_1 = arith.constant 0 : i32
    return %c0_i32, %c0_i32_0 : i32, i32
  }
  func.func @transform_3(%arg0: i32) -> (i32, i32) {
    %c0_i32 = arith.constant 0 : i32
    %c0_i32_0 = arith.constant 0 : i32
    %c0_i32_1 = arith.constant 0 : i32
    return %c0_i32, %c0_i32_0 : i32, i32
  }
  func.func @transform_4(%arg0: i32) -> (i32, i32) {
    %c0_i32 = arith.constant 0 : i32
    %c0_i32_0 = arith.constant 0 : i32
    %c0_i32_1 = arith.constant 0 : i32
    return %c0_i32, %c0_i32_0 : i32, i32
  }
  func.func @transform_5(%arg0: i32) -> (i32, i32) {
    %c0_i32 = arith.constant 0 : i32
    %c0_i32_0 = arith.constant 0 : i32
    %c0_i32_1 = arith.constant 0 : i32
    return %c0_i32, %c0_i32_0 : i32, i32
  }
  func.func @transform_6(%arg0: i32) -> (i32, i32) {
    %c0_i32 = arith.constant 0 : i32
    %c0_i32_0 = arith.constant 0 : i32
    %c0_i32_1 = arith.constant 0 : i32
    return %c0_i32, %c0_i32_0 : i32, i32
  }
  func.func @transform_7(%arg0: i32) -> (i32, i32) {
    %c0_i32 = arith.constant 0 : i32
    %c0_i32_0 = arith.constant 0 : i32
    return %arg0, %c0_i32 : i32, i32
  }
}

module attributes {stable_mosaic.version = 11 : i64} {
  func.func @_projection_head_kernel(%arg0: i32, %arg1: memref<8x128xf32, #tpu.memory_space<vmem>>, %arg2: memref<128x128xf32, #tpu.memory_space<vmem>>, %arg3: memref<1x128xf32, #tpu.memory_space<vmem>>, %arg4: memref<128x128xf32, #tpu.memory_space<vmem>>, %arg5: memref<1x128xf32, #tpu.memory_space<vmem>>, %arg6: memref<1x128xf32, #tpu.memory_space<vmem>>, %arg7: memref<1x128xf32, #tpu.memory_space<vmem>>, %arg8: memref<8x128xf32, #tpu.memory_space<vmem>>) attributes {dimension_semantics = [#tpu.dimension_semantics<parallel>], iteration_bounds = array<i64: 1>, scalar_prefetch = 0 : i64, scratch_operands = 0 : i64, tpu.core_type = #tpu.core_type<tc>, window_params = [{transform_indices = @transform_0, window_bounds = array<i64: 8, 128>}, {pipeline_mode = #tpu.pipeline_mode<synchronous>, transform_indices = @transform_1, window_bounds = array<i64: 128, 128>}, {pipeline_mode = #tpu.pipeline_mode<synchronous>, transform_indices = @transform_2, window_bounds = array<i64: 1, 128>}, {pipeline_mode = #tpu.pipeline_mode<synchronous>, transform_indices = @transform_3, window_bounds = array<i64: 128, 128>}, {pipeline_mode = #tpu.pipeline_mode<synchronous>, transform_indices = @transform_4, window_bounds = array<i64: 1, 128>}, {pipeline_mode = #tpu.pipeline_mode<synchronous>, transform_indices = @transform_5, window_bounds = array<i64: 1, 128>}, {pipeline_mode = #tpu.pipeline_mode<synchronous>, transform_indices = @transform_6, window_bounds = array<i64: 1, 128>}, {transform_indices = @transform_7, window_bounds = array<i64: 8, 128>}]} {
    %c0 = arith.constant 0 : index
    %c0_0 = arith.constant 0 : index
    %0 = vector.load %arg3[%c0, %c0_0] : memref<1x128xf32, #tpu.memory_space<vmem>>, vector<1x128xf32>
    %c0_1 = arith.constant 0 : index
    %c0_2 = arith.constant 0 : index
    %1 = vector.load %arg5[%c0_1, %c0_2] : memref<1x128xf32, #tpu.memory_space<vmem>>, vector<1x128xf32>
    %c0_3 = arith.constant 0 : index
    %c0_4 = arith.constant 0 : index
    %2 = vector.load %arg6[%c0_3, %c0_4] : memref<1x128xf32, #tpu.memory_space<vmem>>, vector<1x128xf32>
    %c0_5 = arith.constant 0 : index
    %c0_6 = arith.constant 0 : index
    %3 = vector.load %arg7[%c0_5, %c0_6] : memref<1x128xf32, #tpu.memory_space<vmem>>, vector<1x128xf32>
    %c0_7 = arith.constant 0 : index
    %c0_8 = arith.constant 0 : index
    %4 = vector.load %arg1[%c0_7, %c0_8] : memref<8x128xf32, #tpu.memory_space<vmem>>, vector<8x128xf32>
    %c0_9 = arith.constant 0 : index
    %c0_10 = arith.constant 0 : index
    %5 = vector.load %arg2[%c0_9, %c0_10] : memref<128x128xf32, #tpu.memory_space<vmem>>, vector<128x128xf32>
    %cst = arith.constant dense<0.000000e+00> : vector<8x128xf32>
    %6 = tpu.matmul %4, %5, %cst {dimension_numbers = #tpu.dot_dimension_numbers<[1], [0], [0], [1], [0, 0, 1, 1], [], []>} : vector<8x128xf32>, vector<128x128xf32>, vector<8x128xf32> -> vector<8x128xf32>
    %7 = vector.broadcast %0 : vector<1x128xf32> to vector<8x128xf32>
    %8 = arith.addf %6, %7 : vector<8x128xf32>
    %cst_11 = arith.constant 5.000000e-01 : f32
    %9 = vector.broadcast %cst_11 : f32 to vector<8x128xf32>
    %10 = arith.mulf %9, %8 : vector<8x128xf32>
    %cst_12 = arith.constant 0.707106769 : f32
    %11 = vector.broadcast %cst_12 : f32 to vector<8x128xf32>
    %12 = arith.mulf %8, %11 : vector<8x128xf32>
    %13 = math.erf %12 : vector<8x128xf32>
    %cst_13 = arith.constant 1.000000e+00 : f32
    %14 = vector.broadcast %cst_13 : f32 to vector<8x128xf32>
    %15 = arith.addf %14, %13 : vector<8x128xf32>
    %16 = arith.mulf %10, %15 : vector<8x128xf32>
    %c0_14 = arith.constant 0 : index
    %c0_15 = arith.constant 0 : index
    %17 = vector.load %arg4[%c0_14, %c0_15] : memref<128x128xf32, #tpu.memory_space<vmem>>, vector<128x128xf32>
    %cst_16 = arith.constant dense<0.000000e+00> : vector<8x128xf32>
    %18 = tpu.matmul %16, %17, %cst_16 {dimension_numbers = #tpu.dot_dimension_numbers<[1], [0], [0], [1], [0, 0, 1, 1], [], []>} : vector<8x128xf32>, vector<128x128xf32>, vector<8x128xf32> -> vector<8x128xf32>
    %19 = vector.broadcast %1 : vector<1x128xf32> to vector<8x128xf32>
    %20 = arith.addf %18, %19 : vector<8x128xf32>
    %21 = arith.addf %20, %8 : vector<8x128xf32>
    %cst_17 = arith.constant dense<0.000000e+00> : vector<8xf32>
    %22 = vector.multi_reduction <add>, %21, %cst_17 [1] : vector<8x128xf32> to vector<8xf32>
    %23 = vector.shape_cast %22 : vector<8xf32> to vector<8x1xf32>
    %cst_18 = arith.constant 1.562500e-02 : f32
    %24 = vector.broadcast %cst_18 : f32 to vector<8x1xf32>
    %25 = arith.mulf %23, %24 : vector<8x1xf32>
    %26 = tpu.iota {dimensions = array<i32: 1>} : vector<8x128xi32>
    %c64_i32 = arith.constant 64 : i32
    %27 = vector.broadcast %c64_i32 : i32 to vector<8x128xi32>
    %28 = arith.cmpi slt, %26, %27 : vector<8x128xi32>
    %29 = vector.broadcast %25 : vector<8x1xf32> to vector<8x128xf32>
    %30 = arith.subf %21, %29 : vector<8x128xf32>
    %cst_19 = arith.constant 0.000000e+00 : f32
    %31 = vector.broadcast %cst_19 : f32 to vector<8x128xf32>
    %32 = arith.select %28, %30, %31 : vector<8x128xi1>, vector<8x128xf32>
    %33 = arith.mulf %32, %32 : vector<8x128xf32>
    %cst_20 = arith.constant dense<0.000000e+00> : vector<8xf32>
    %34 = vector.multi_reduction <add>, %33, %cst_20 [1] : vector<8x128xf32> to vector<8xf32>
    %35 = vector.shape_cast %34 : vector<8xf32> to vector<8x1xf32>
    %cst_21 = arith.constant 1.562500e-02 : f32
    %36 = vector.broadcast %cst_21 : f32 to vector<8x1xf32>
    %37 = arith.mulf %35, %36 : vector<8x1xf32>
    %cst_22 = arith.constant 9.99999974E-6 : f32
    %38 = vector.broadcast %cst_22 : f32 to vector<8x1xf32>
    %39 = arith.addf %37, %38 : vector<8x1xf32>
    %40 = math.rsqrt %39 : vector<8x1xf32>
    %41 = vector.broadcast %40 : vector<8x1xf32> to vector<8x128xf32>
    %42 = arith.mulf %32, %41 : vector<8x128xf32>
    %43 = vector.broadcast %2 : vector<1x128xf32> to vector<8x128xf32>
    %44 = arith.mulf %42, %43 : vector<8x128xf32>
    %45 = vector.broadcast %3 : vector<1x128xf32> to vector<8x128xf32>
    %46 = arith.addf %44, %45 : vector<8x128xf32>
    %c0_23 = arith.constant 0 : index
    %c0_24 = arith.constant 0 : index
    %47 = vector.load %arg8[%c0_23, %c0_24] : memref<8x128xf32, #tpu.memory_space<vmem>>, vector<8x128xf32>
    tpu.vector_store %arg8[%c0_23, %c0_24], %46 {strides = array<i32>} : memref<8x128xf32, #tpu.memory_space<vmem>>, vector<8x128xf32>,
    return
  }
  func.func @transform_0(%arg0: i32) -> (i32, i32) {
    %c0_i32 = arith.constant 0 : i32
    %c0_i32_0 = arith.constant 0 : i32
    return %arg0, %c0_i32 : i32, i32
  }
  func.func @transform_1(%arg0: i32) -> (i32, i32) {
    %c0_i32 = arith.constant 0 : i32
    %c0_i32_0 = arith.constant 0 : i32
    %c0_i32_1 = arith.constant 0 : i32
    return %c0_i32, %c0_i32_0 : i32, i32
  }
  func.func @transform_2(%arg0: i32) -> (i32, i32) {
    %c0_i32 = arith.constant 0 : i32
    %c0_i32_0 = arith.constant 0 : i32
    %c0_i32_1 = arith.constant 0 : i32
    return %c0_i32, %c0_i32_0 : i32, i32
  }
  func.func @transform_3(%arg0: i32) -> (i32, i32) {
    %c0_i32 = arith.constant 0 : i32
    %c0_i32_0 = arith.constant 0 : i32
    %c0_i32_1 = arith.constant 0 : i32
    return %c0_i32, %c0_i32_0 : i32, i32
  }
  func.func @transform_4(%arg0: i32) -> (i32, i32) {
    %c0_i32 = arith.constant 0 : i32
    %c0_i32_0 = arith.constant 0 : i32
    %c0_i32_1 = arith.constant 0 : i32
    return %c0_i32, %c0_i32_0 : i32, i32
  }
  func.func @transform_5(%arg0: i32) -> (i32, i32) {
    %c0_i32 = arith.constant 0 : i32
    %c0_i32_0 = arith.constant 0 : i32
    %c0_i32_1 = arith.constant 0 : i32
    return %c0_i32, %c0_i32_0 : i32, i32
  }
  func.func @transform_6(%arg0: i32) -> (i32, i32) {
    %c0_i32 = arith.constant 0 : i32
    %c0_i32_0 = arith.constant 0 : i32
    %c0_i32_1 = arith.constant 0 : i32
    return %c0_i32, %c0_i32_0 : i32, i32
  }
  func.func @transform_7(%arg0: i32) -> (i32, i32) {
    %c0_i32 = arith.constant 0 : i32
    %c0_i32_0 = arith.constant 0 : i32
    return %arg0, %c0_i32 : i32, i32
  }
}

</mosaic_0001>

<bundles_post_ra>
// kernel: tpu_custom_call.1
= control target key start
LH: loop header
LB: loop body
LE: loop exit
PB: predicated region body
PF: predicated region fallthrough
CT: control target
= control target key end

     0   :  { %12 = vsyncpa [#allocation3], 0  ;;  %s438_s0 = inlined_call_operand.hbm [shape: f32[8,128], index: 0, kind: input, shape index: {}]   ;;  %s439_s1 = inlined_call_operand.hbm [shape: f32[128,128], index: 1, kind: input, shape index: {}]   ;;  %s440_s2 = inlined_call_operand.vmem [shape: f32[1,128], index: 2, kind: input, shape index: {}]   ;;  %s441_s3 = inlined_call_operand.hbm [shape: f32[128,128], index: 3, kind: input, shape index: {}]   ;;  %s442_s4 = inlined_call_operand.vmem [shape: f32[1,128], index: 4, kind: input, shape index: {}]   ;;  %s443_s5 = inlined_call_operand.vmem [shape: f32[1,128], index: 5, kind: input, shape index: {}]   ;;  %s444_s6 = inlined_call_operand.vmem [shape: f32[1,128], index: 6, kind: input, shape index: {}]   ;;  %s445_s7 = inlined_call_operand.hbm [shape: f32[8,128], index: 7, kind: output, shape index: {}]  }
   0x1   :  { %13 = vsyncpa [#allocation6], 0  ;;  %s30_s26 = sshll.u32 %s439_s1, 4  ;;  %s31_s26 = int_to_ptr.hbm [resolvable:$true] %s30_s26 }
   0x2   :  { %14 = vsyncpa [#allocation4], 0  ;;  %s368_s27 = smov [#allocation5]   ;;  %s20_s8 = sshll.u32 %s438_s0, 4  ;;  %s21_s8 = int_to_ptr.hbm [resolvable:$true] %s20_s8 }
   0x3   :  { %s32_s28 = sshll.u32 %s368_s27, 4  ;;  %s369_s9 = smov 128   ;;  %s33_s28 = int_to_ptr.vmem [resolvable:$true] %s32_s28 }
   0x4   :  { %s370_s10 = smov 8   ;;  %s371_s11 = smov [#allocation2]  }
   0x5   :  { %38 = dma.hbm_to_vmem [thread:$0]  %s31_s26, 2048, %s33_s28, [#allocation6], %s369_s9, %s369_s9, %s370_s10  }
   0x6   :  { %s22_s12 = sshll.u32 %s371_s11, 4  ;;  %s45_s15 = sshll.u32 %s441_s3, 4  ;;  %s23_s12 = int_to_ptr.vmem [resolvable:$true] %s22_s12  ;;  %s46_s15 = int_to_ptr.hbm [resolvable:$true] %s45_s15 }
   0x7   :  { %25 = dma.hbm_to_vmem [thread:$0]  %s21_s8, 128, %s23_s12, [#allocation3]  }
   0x8   :  { %s372_s1 = smov [#allocation7]  }
   0x9   :  { %s47_s16 = sshll.u32 %s372_s1, 4  ;;  %s48_s16 = int_to_ptr.vmem [resolvable:$true] %s47_s16 }
   0xa   :  { %53 = dma.hbm_to_vmem [thread:$0]  %s46_s15, 2048, %s48_s16, [#allocation6], %s369_s9, %s369_s9, %s370_s10  }
   0xb   :  { %362 = dma.done.wait [#allocation3], 128  }
   0xc   :  { %363 = vsyncadd [#allocation3], 4294967168 }
   0xd   :  { %364 = dma.done.wait [#allocation6], 4096  }
   0xe   :  { %365 = vsyncadd [#allocation6], 4294963200  ;;  %v92_v0 = vld [vmem:[#allocation5 + $0x78] sm:$0xff]  ;;  %v91_v1 = vld [vmem:[#allocation5 + $0x70] sm:$0xff]  ;;  %s373_s21 = smov [#allocation8]   ;;  %s240_s25 = sshll.u32 %s445_s7, 4  ;;  %s241_s25 = int_to_ptr.hbm [resolvable:$true] %s240_s25 }
   0xf   :  { %96 = vmatpush.msra.mxu0 %v92_v0  ;;  %v90_v2 = vld [vmem:[#allocation5 + $0x68] sm:$0xff]  ;;  %v89_v3 = vld [vmem:[#allocation5 + $0x60] sm:$0xff]  ;;  %v88_v4 = vld [vmem:[#allocation5 + $0x58] sm:$0xff]  ;;  %s238_s22 = sshll.u32 %s373_s21, 4  ;;  %s239_s22 = int_to_ptr.vmem [resolvable:$true] %s238_s22 }
  0x10   :  { %v87_v5 = vld [vmem:[#allocation5 + $0x50] sm:$0xff]  ;;  %v86_v6 = vld [vmem:[#allocation5 + $0x48] sm:$0xff]  ;;  %v85_v7 = vld [vmem:[#allocation5 + $0x40] sm:$0xff] }
  0x11   :  { %97 = vmatpush.msra.mxu0 %v91_v1  ;;  %v84_v8 = vld [vmem:[#allocation5 + $0x38] sm:$0xff]  ;;  %v83_v9 = vld [vmem:[#allocation5 + $0x30] sm:$0xff]  ;;  %v82_v10 = vld [vmem:[#allocation5 + $0x28] sm:$0xff] }
  0x12   :  { %v81_v11 = vld [vmem:[#allocation5 + $0x20] sm:$0xff]  ;;  %v80_v12 = vld [vmem:[#allocation5 + $0x18] sm:$0xff]  ;;  %v79_v13 = vld [vmem:[#allocation5 + $0x10] sm:$0xff] }
  0x13   :  { %98 = vmatpush.msra.mxu0 %v90_v2  ;;  %v78_v14 = vld [vmem:[#allocation5 + $0x8] sm:$0xff]  ;;  %v77_v15 = vld [vmem:[#allocation5] sm:$0xff]  ;;  %v76_v16 = vld [vmem:[#allocation2] sm:$0xff] }
  0x14   :  { %v175_v17 = vld [vmem:[#allocation7 + $0x78] sm:$0xff]  ;;  %v174_v18 = vld [vmem:[#allocation7 + $0x70] sm:$0xff]  ;;  %v173_v19 = vld [vmem:[#allocation7 + $0x68] sm:$0xff] }
  0x15   :  { %99 = vmatpush.msra.mxu0 %v89_v3  ;;  %179 = vmatpush.msra.mxu1 %v175_v17  ;;  %v172_v20 = vld [vmem:[#allocation7 + $0x60] sm:$0xff]  ;;  %v171_v21 = vld [vmem:[#allocation7 + $0x58] sm:$0xff]  ;;  %v170_v22 = vld [vmem:[#allocation7 + $0x50] sm:$0xff] }
  0x16   :  { %v169_v23 = vld [vmem:[#allocation7 + $0x48] sm:$0xff]  ;;  %v168_v24 = vld [vmem:[#allocation7 + $0x40] sm:$0xff]  ;;  %v167_v25 = vld [vmem:[#allocation7 + $0x38] sm:$0xff] }
  0x17   :  { %100 = vmatpush.msra.mxu0 %v88_v4  ;;  %180 = vmatpush.msra.mxu1 %v174_v18  ;;  %v166_v26 = vld [vmem:[#allocation7 + $0x30] sm:$0xff]  ;;  %v165_v27 = vld [vmem:[#allocation7 + $0x28] sm:$0xff]  ;;  %v164_v28 = vld [vmem:[#allocation7 + $0x20] sm:$0xff] }
  0x18   :  { %v258_v29 = vld [vmem:[%s440_s2] ss:$0 sm:$0xff]  ;;  %v162_v31 = vld [vmem:[#allocation7 + $0x10] sm:$0xff]  ;;  %v161_v34 = vld [vmem:[#allocation7 + $0x8] sm:$0xff] }
  0x19   :  { %101 = vmatpush.msra.mxu0 %v87_v5  ;;  %181 = vmatpush.msra.mxu1 %v173_v19  ;;  %v163_v30 = vld [vmem:[#allocation7 + $0x18] sm:$0xff]  ;;  %v160_v36 = vld [vmem:[#allocation7] sm:$0xff] }
  0x1b   :  { %102 = vmatpush.msra.mxu0 %v86_v6  ;;  %182 = vmatpush.msra.mxu1 %v172_v20 }
  0x1d   :  { %103 = vmatpush.msra.mxu0 %v85_v7  ;;  %183 = vmatpush.msra.mxu1 %v171_v21 }
  0x1f   :  { %104 = vmatpush.msra.mxu0 %v84_v8  ;;  %184 = vmatpush.msra.mxu1 %v170_v22 }
  0x21   :  { %105 = vmatpush.msra.mxu0 %v83_v9  ;;  %185 = vmatpush.msra.mxu1 %v169_v23 }
  0x23   :  { %106 = vmatpush.msra.mxu0 %v82_v10  ;;  %186 = vmatpush.msra.mxu1 %v168_v24 }
  0x25   :  { %107 = vmatpush.msra.mxu0 %v81_v11  ;;  %187 = vmatpush.msra.mxu1 %v167_v25  ;;  %v259_v11 = vld [vmem:[%s442_s4] ss:$0 sm:$0xff] }
  0x27   :  { %108 = vmatpush.msra.mxu0 %v80_v12  ;;  %188 = vmatpush.msra.mxu1 %v166_v26 }
  0x29   :  { %109 = vmatpush.msra.mxu0 %v79_v13  ;;  %189 = vmatpush.msra.mxu1 %v165_v27 }
  0x2b   :  { %110 = vmatpush.msra.mxu0 %v78_v14  ;;  %190 = vmatpush.msra.mxu1 %v164_v28 }
  0x2d   :  { %111 = vmatpush.msra.mxu0 %v77_v15  ;;  %191 = vmatpush.msra.mxu1 %v163_v30  ;;  %v203_v15 = vlaneseq }
  0x2e   :  { %112 = vmatmul.f32.vlgmr.msra.gmra.mxu0 %v76_v16 }
  0x2f   :  { %192 = vmatpush.msra.mxu1 %v162_v31  ;;  %v204_v16 = vand.u32 127, %v203_v15  ;;  %v260_v31 = vld [vmem:[%s443_s5] ss:$0 sm:$0xff] }
  0x31   :  { %193 = vmatpush.msra.mxu1 %v161_v34  ;;  %vm205_vm4 = vcmp.lt.s32.totalorder %v204_v16, 64  ;;  %v261_v34 = vld [vmem:[%s444_s6] ss:$0 sm:$0xff] }
  0x33   :  { %194 = vmatpush.msra.mxu1 %v160_v36 }
  0xab   :  { %v113_v32 = vpop.f32.mrf.mxu0 }
  0xac   :  { %v114_v33 = vadd.f32 %v258_v29, %v113_v32 }
  0xae   :  { %v117_v35 = vmul.f32 0.70710677, %v114_v33  ;;  %v116_v8 = vmul.f32 0.5, %v114_v33 }
  0xb0   :  { %v118_v37 = vmul.f32 %v117_v35, %v117_v35 }
  0xb2   :  { %v119_v38 = vmin.f32 %v118_v37, 16.0 }
  0xb4   :  { %v120_v39 = vmul.f32 2.1237322e-06, %v119_v38  ;;  %v131_v40 = vmul.f32 3.8918573e-05, %v119_v38 }
  0xb6   :  { %v121_v41 = vadd.f32 0.00028619796, %v120_v39  ;;  %v132_v42 = vadd.f32 0.001143296, %v131_v40 }
  0xb8   :  { %v122_v43 = vmul.f32 %v121_v41, %v119_v38  ;;  %v133_v44 = vmul.f32 %v132_v42, %v119_v38 }
  0xba   :  { %v134_v45 = vadd.f32 0.014752088, %v133_v44  ;;  %v123_v46 = vadd.f32 0.0036580483, %v122_v43 }
  0xbc   :  { %v135_v47 = vmul.f32 %v134_v45, %v119_v38  ;;  %v124_v49 = vmul.f32 %v123_v46, %v119_v38 }
  0xbe   :  { %v136_v48 = vadd.f32 0.112945676, %v135_v47  ;;  %v125_v52 = vadd.f32 0.05243302, %v124_v49 }
  0xc0   :  { %v137_v50 = vmul.f32 %v136_v48, %v119_v38  ;;  %v126_v55 = vmul.f32 %v125_v52, %v119_v38 }
  0xc2   :  { %v138_v51 = vadd.f32 0.4994258, %v137_v50  ;;  %v127_v56 = vadd.f32 0.18741608, %v126_v55 }
  0xc4   :  { %v139_v53 = vmul.f32 %v138_v51, %v119_v38  ;;  %v128_v58 = vmul.f32 %v127_v56, %v119_v38 }
  0xc6   :  { %v140_v54 = vadd.f32 1.0, %v139_v53  ;;  %v129_v62 = vadd.f32 1.1283791, %v128_v58 }
  0xc8   :  { %262 = vrcp.f32 %v140_v54  ;;  %v152_v61 = vand.u32 2147483648, %v140_v54  ;;  %v150_v0 = vand.u32 2147483647, %v140_v54  ;;  %vm146_vm1 = vweird.f32 %v140_v54 }
  0xc9   :  { %v130_v3 = vmul.f32 %v129_v62, %v117_v35 }
  0xca   :  { %v153_v2 = vor.u32 1.1754944e-38, %v152_v61  ;;  %vm151_vm3 = vcmp.eq.f32.partialorder %v150_v0, 8.507059e+37 }
  0xce   :  { %v263_v57 = vpop.eup %262 }
  0xcf   :  { %v142_v59 = vmul.f32 %v263_v57, %v140_v54  ;;  %vm147_vm0 = vweird.f32 %v263_v57 }
  0xd0   :  { %vm148_vm2 = vmor %vm146_vm1, %vm147_vm0 }
  0xd1   :  { %v143_v60 = vsub.f32 1.0, %v142_v59 }
  0xd3   :  { %v144_v63 = vmul.f32 %v263_v57, %v143_v60 }
  0xd5   :  { %v145_v1 = vadd.f32 %v263_v57, %v144_v63 }
  0xd7   :  { %v149_v4 = vsel %vm148_vm2, %v263_v57, %v145_v1 }
  0xd8   :  { %v154_v5 = vsel %vm151_vm3, %v153_v2, %v149_v4 }
  0xd9   :  { %v155_v6 = vmul.f32 %v154_v5, %v130_v3 }
  0xdb   :  { %v251_v7 = vclamps-f32 %v155_v6, 1.0 }
  0xdd   :  { %v158_v9 = vadd.f32 1.0, %v251_v7 }
  0xdf   :  { %v159_v10 = vmul.f32 %v158_v9, %v116_v8 }
  0xe1   :  { %195 = vmatmul.f32.vlgmr.msra.gmra.mxu1 %v159_v10 }
 0x15e   :  { %v196_v12 = vpop.f32.mrf.mxu1 }
 0x15f   :  { %v197_v13 = vadd.f32 %v259_v11, %v196_v12 }
 0x161   :  { %v199_v14 = vadd.f32 %v197_v13, %v114_v33 }
 0x163   :  { %200 = vadd.xlane.f32.xlu0 %v199_v14 }
 0x1d6   :  { %v201_v17 = vpop.xlane.xlu0 %200 }
 0x1d7   :  { %v202_v18 = vmul.f32 0.015625, %v201_v17 }
 0x1d9   :  { %v206_v19 = vsub.f32 %v199_v14, %v202_v18 }
 0x1db   :  { %v207_v20 = vsel %vm205_vm4, %v206_v19, 0.0 }
 0x1dc   :  { %v208_v21 = vmul.f32 %v207_v20, %v207_v20 }
 0x1de   :  { %209 = vadd.xlane.f32.xlu0 %v208_v21 }
 0x251   :  { %v210_v22 = vpop.xlane.xlu0 %209 }
 0x252   :  { %v211_v23 = vmul.f32 0.015625, %v210_v22 }
 0x254   :  { %v212_v24 = vadd.f32 1e-05, %v211_v23 }
 0x256   :  { %264 = vrsqrt.f32 %v212_v24  ;;  %vm219_vm6 = vweird.f32 %v212_v24 }
 0x25c   :  { %v265_v25 = vpop.eup %264 }
 0x25d   :  { %v214_v26 = vmul.f32 %v265_v25, %v212_v24  ;;  %vm220_vm5 = vweird.f32 %v265_v25 }
 0x25e   :  { %vm221_vm7 = vmor %vm219_vm6, %vm220_vm5 }
 0x25f   :  { %v215_v27 = vmul.f32 %v265_v25, %v214_v26 }
 0x261   :  { %v216_v28 = vmul.f32 0.5, %v215_v27 }
 0x263   :  { %v217_v29 = vsub.f32 1.5, %v216_v28 }
 0x265   :  { %v218_v30 = vmul.f32 %v265_v25, %v217_v29 }
 0x267   :  { %v222_v32 = vsel %vm221_vm7, %v265_v25, %v218_v30 }
 0x268   :  { %v223_v33 = vmul.f32 %v222_v32, %v207_v20 }
 0x26a   :  { %v227_v35 = vmul.f32 %v260_v31, %v223_v33 }
 0x26c   :  { %v231_v36 = vadd.f32 %v261_v34, %v227_v35 }
 0x26e   :  { %232 = vst [vmem:[#allocation8] sm:$0xff] %v231_v36 }
 0x26f   :  { %243 = dma.vmem_to_hbm [thread:$0]  %s239_s22, 128, %s241_s25, [#allocation4]  }
 0x270   :  { %366 = dma.done.wait [#allocation4], 128  }
 0x271   :  { %367 = vsyncadd [#allocation4], 4294967168 }
 0x272   :  { %248 = vsyncpa [#allocation3], 1 }
 0x273   :  { %249 = vsyncpa [#allocation6], 1 }
 0x274   :  { %250 = vsyncpa [#allocation4], 1 }

// kernel: tpu_custom_call.1
= control target key start
LH: loop header
LB: loop body
LE: loop exit
PB: predicated region body
PF: predicated region fallthrough
CT: control target
= control target key end

     0   :  { %12 = vsyncpa [#allocation3], 0  ;;  %s438_s0 = inlined_call_operand.hbm [shape: f32[8,128], index: 0, kind: input, shape index: {}]   ;;  %s439_s1 = inlined_call_operand.hbm [shape: f32[128,128], index: 1, kind: input, shape index: {}]   ;;  %s440_s2 = inlined_call_operand.vmem [shape: f32[1,128], index: 2, kind: input, shape index: {}]   ;;  %s441_s3 = inlined_call_operand.hbm [shape: f32[128,128], index: 3, kind: input, shape index: {}]   ;;  %s442_s4 = inlined_call_operand.vmem [shape: f32[1,128], index: 4, kind: input, shape index: {}]   ;;  %s443_s5 = inlined_call_operand.vmem [shape: f32[1,128], index: 5, kind: input, shape index: {}]   ;;  %s444_s6 = inlined_call_operand.vmem [shape: f32[1,128], index: 6, kind: input, shape index: {}]   ;;  %s445_s7 = inlined_call_operand.hbm [shape: f32[8,128], index: 7, kind: output, shape index: {}]  }
   0x1   :  { %13 = vsyncpa [#allocation6], 0  ;;  %s30_s26 = sshll.u32 %s439_s1, 4  ;;  %s31_s26 = int_to_ptr.hbm [resolvable:$true] %s30_s26 }
   0x2   :  { %14 = vsyncpa [#allocation4], 0  ;;  %s368_s27 = smov [#allocation5]   ;;  %s20_s8 = sshll.u32 %s438_s0, 4  ;;  %s21_s8 = int_to_ptr.hbm [resolvable:$true] %s20_s8 }
   0x3   :  { %s32_s28 = sshll.u32 %s368_s27, 4  ;;  %s369_s9 = smov 128   ;;  %s33_s28 = int_to_ptr.vmem [resolvable:$true] %s32_s28 }
   0x4   :  { %s370_s10 = smov 8   ;;  %s371_s11 = smov [#allocation2]  }
   0x5   :  { %38 = dma.hbm_to_vmem [thread:$0]  %s31_s26, 2048, %s33_s28, [#allocation6], %s369_s9, %s369_s9, %s370_s10  }
   0x6   :  { %s22_s12 = sshll.u32 %s371_s11, 4  ;;  %s45_s15 = sshll.u32 %s441_s3, 4  ;;  %s23_s12 = int_to_ptr.vmem [resolvable:$true] %s22_s12  ;;  %s46_s15 = int_to_ptr.hbm [resolvable:$true] %s45_s15 }
   0x7   :  { %25 = dma.hbm_to_vmem [thread:$0]  %s21_s8, 128, %s23_s12, [#allocation3]  }
   0x8   :  { %s372_s1 = smov [#allocation7]  }
   0x9   :  { %s47_s16 = sshll.u32 %s372_s1, 4  ;;  %s48_s16 = int_to_ptr.vmem [resolvable:$true] %s47_s16 }
   0xa   :  { %53 = dma.hbm_to_vmem [thread:$0]  %s46_s15, 2048, %s48_s16, [#allocation6], %s369_s9, %s369_s9, %s370_s10  }
   0xb   :  { %362 = dma.done.wait [#allocation3], 128  }
   0xc   :  { %363 = vsyncadd [#allocation3], 4294967168 }
   0xd   :  { %364 = dma.done.wait [#allocation6], 4096  }
   0xe   :  { %365 = vsyncadd [#allocation6], 4294963200  ;;  %v92_v0 = vld [vmem:[#allocation5 + $0x78] sm:$0xff]  ;;  %v91_v1 = vld [vmem:[#allocation5 + $0x70] sm:$0xff]  ;;  %s373_s21 = smov [#allocation8]   ;;  %s240_s25 = sshll.u32 %s445_s7, 4  ;;  %s241_s25 = int_to_ptr.hbm [resolvable:$true] %s240_s25 }
   0xf   :  { %96 = vmatpush.msra.mxu0 %v92_v0  ;;  %v90_v2 = vld [vmem:[#allocation5 + $0x68] sm:$0xff]  ;;  %v89_v3 = vld [vmem:[#allocation5 + $0x60] sm:$0xff]  ;;  %v88_v4 = vld [vmem:[#allocation5 + $0x58] sm:$0xff]  ;;  %s238_s22 = sshll.u32 %s373_s21, 4  ;;  %s239_s22 = int_to_ptr.vmem [resolvable:$true] %s238_s22 }
  0x10   :  { %v87_v5 = vld [vmem:[#allocation5 + $0x50] sm:$0xff]  ;;  %v86_v6 = vld [vmem:[#allocation5 + $0x48] sm:$0xff]  ;;  %v85_v7 = vld [vmem:[#allocation5 + $0x40] sm:$0xff] }
  0x11   :  { %97 = vmatpush.msra.mxu0 %v91_v1  ;;  %v84_v8 = vld [vmem:[#allocation5 + $0x38] sm:$0xff]  ;;  %v83_v9 = vld [vmem:[#allocation5 + $0x30] sm:$0xff]  ;;  %v82_v10 = vld [vmem:[#allocation5 + $0x28] sm:$0xff] }
  0x12   :  { %v81_v11 = vld [vmem:[#allocation5 + $0x20] sm:$0xff]  ;;  %v80_v12 = vld [vmem:[#allocation5 + $0x18] sm:$0xff]  ;;  %v79_v13 = vld [vmem:[#allocation5 + $0x10] sm:$0xff] }
  0x13   :  { %98 = vmatpush.msra.mxu0 %v90_v2  ;;  %v78_v14 = vld [vmem:[#allocation5 + $0x8] sm:$0xff]  ;;  %v77_v15 = vld [vmem:[#allocation5] sm:$0xff]  ;;  %v76_v16 = vld [vmem:[#allocation2] sm:$0xff] }
  0x14   :  { %v175_v17 = vld [vmem:[#allocation7 + $0x78] sm:$0xff]  ;;  %v174_v18 = vld [vmem:[#allocation7 + $0x70] sm:$0xff]  ;;  %v173_v19 = vld [vmem:[#allocation7 + $0x68] sm:$0xff] }
  0x15   :  { %99 = vmatpush.msra.mxu0 %v89_v3  ;;  %179 = vmatpush.msra.mxu1 %v175_v17  ;;  %v172_v20 = vld [vmem:[#allocation7 + $0x60] sm:$0xff]  ;;  %v171_v21 = vld [vmem:[#allocation7 + $0x58] sm:$0xff]  ;;  %v170_v22 = vld [vmem:[#allocation7 + $0x50] sm:$0xff] }
  0x16   :  { %v169_v23 = vld [vmem:[#allocation7 + $0x48] sm:$0xff]  ;;  %v168_v24 = vld [vmem:[#allocation7 + $0x40] sm:$0xff]  ;;  %v167_v25 = vld [vmem:[#allocation7 + $0x38] sm:$0xff] }
  0x17   :  { %100 = vmatpush.msra.mxu0 %v88_v4  ;;  %180 = vmatpush.msra.mxu1 %v174_v18  ;;  %v166_v26 = vld [vmem:[#allocation7 + $0x30] sm:$0xff]  ;;  %v165_v27 = vld [vmem:[#allocation7 + $0x28] sm:$0xff]  ;;  %v164_v28 = vld [vmem:[#allocation7 + $0x20] sm:$0xff] }
  0x18   :  { %v258_v29 = vld [vmem:[%s440_s2] ss:$0 sm:$0xff]  ;;  %v162_v31 = vld [vmem:[#allocation7 + $0x10] sm:$0xff]  ;;  %v161_v34 = vld [vmem:[#allocation7 + $0x8] sm:$0xff] }
  0x19   :  { %101 = vmatpush.msra.mxu0 %v87_v5  ;;  %181 = vmatpush.msra.mxu1 %v173_v19  ;;  %v163_v30 = vld [vmem:[#allocation7 + $0x18] sm:$0xff]  ;;  %v160_v36 = vld [vmem:[#allocation7] sm:$0xff] }
  0x1b   :  { %102 = vmatpush.msra.mxu0 %v86_v6  ;;  %182 = vmatpush.msra.mxu1 %v172_v20 }
  0x1d   :  { %103 = vmatpush.msra.mxu0 %v85_v7  ;;  %183 = vmatpush.msra.mxu1 %v171_v21 }
  0x1f   :  { %104 = vmatpush.msra.mxu0 %v84_v8  ;;  %184 = vmatpush.msra.mxu1 %v170_v22 }
  0x21   :  { %105 = vmatpush.msra.mxu0 %v83_v9  ;;  %185 = vmatpush.msra.mxu1 %v169_v23 }
  0x23   :  { %106 = vmatpush.msra.mxu0 %v82_v10  ;;  %186 = vmatpush.msra.mxu1 %v168_v24 }
  0x25   :  { %107 = vmatpush.msra.mxu0 %v81_v11  ;;  %187 = vmatpush.msra.mxu1 %v167_v25  ;;  %v259_v11 = vld [vmem:[%s442_s4] ss:$0 sm:$0xff] }
  0x27   :  { %108 = vmatpush.msra.mxu0 %v80_v12  ;;  %188 = vmatpush.msra.mxu1 %v166_v26 }
  0x29   :  { %109 = vmatpush.msra.mxu0 %v79_v13  ;;  %189 = vmatpush.msra.mxu1 %v165_v27 }
  0x2b   :  { %110 = vmatpush.msra.mxu0 %v78_v14  ;;  %190 = vmatpush.msra.mxu1 %v164_v28 }
  0x2d   :  { %111 = vmatpush.msra.mxu0 %v77_v15  ;;  %191 = vmatpush.msra.mxu1 %v163_v30  ;;  %v203_v15 = vlaneseq }
  0x2e   :  { %112 = vmatmul.f32.vlgmr.msra.gmra.mxu0 %v76_v16 }
  0x2f   :  { %192 = vmatpush.msra.mxu1 %v162_v31  ;;  %v204_v16 = vand.u32 127, %v203_v15  ;;  %v260_v31 = vld [vmem:[%s443_s5] ss:$0 sm:$0xff] }
  0x31   :  { %193 = vmatpush.msra.mxu1 %v161_v34  ;;  %vm205_vm4 = vcmp.lt.s32.totalorder %v204_v16, 64  ;;  %v261_v34 = vld [vmem:[%s444_s6] ss:$0 sm:$0xff] }
  0x33   :  { %194 = vmatpush.msra.mxu1 %v160_v36 }
  0xab   :  { %v113_v32 = vpop.f32.mrf.mxu0 }
  0xac   :  { %v114_v33 = vadd.f32 %v258_v29, %v113_v32 }
  0xae   :  { %v117_v35 = vmul.f32 0.70710677, %v114_v33  ;;  %v116_v8 = vmul.f32 0.5, %v114_v33 }
  0xb0   :  { %v118_v37 = vmul.f32 %v117_v35, %v117_v35 }
  0xb2   :  { %v119_v38 = vmin.f32 %v118_v37, 16.0 }
  0xb4   :  { %v120_v39 = vmul.f32 2.1237322e-06, %v119_v38  ;;  %v131_v40 = vmul.f32 3.8918573e-05, %v119_v38 }
  0xb6   :  { %v121_v41 = vadd.f32 0.00028619796, %v120_v39  ;;  %v132_v42 = vadd.f32 0.001143296, %v131_v40 }
  0xb8   :  { %v122_v43 = vmul.f32 %v121_v41, %v119_v38  ;;  %v133_v44 = vmul.f32 %v132_v42, %v119_v38 }
  0xba   :  { %v134_v45 = vadd.f32 0.014752088, %v133_v44  ;;  %v123_v46 = vadd.f32 0.0036580483, %v122_v43 }
  0xbc   :  { %v135_v47 = vmul.f32 %v134_v45, %v119_v38  ;;  %v124_v49 = vmul.f32 %v123_v46, %v119_v38 }
  0xbe   :  { %v136_v48 = vadd.f32 0.112945676, %v135_v47  ;;  %v125_v52 = vadd.f32 0.05243302, %v124_v49 }
  0xc0   :  { %v137_v50 = vmul.f32 %v136_v48, %v119_v38  ;;  %v126_v55 = vmul.f32 %v125_v52, %v119_v38 }
  0xc2   :  { %v138_v51 = vadd.f32 0.4994258, %v137_v50  ;;  %v127_v56 = vadd.f32 0.18741608, %v126_v55 }
  0xc4   :  { %v139_v53 = vmul.f32 %v138_v51, %v119_v38  ;;  %v128_v58 = vmul.f32 %v127_v56, %v119_v38 }
  0xc6   :  { %v140_v54 = vadd.f32 1.0, %v139_v53  ;;  %v129_v62 = vadd.f32 1.1283791, %v128_v58 }
  0xc8   :  { %262 = vrcp.f32 %v140_v54  ;;  %v152_v61 = vand.u32 2147483648, %v140_v54  ;;  %v150_v0 = vand.u32 2147483647, %v140_v54  ;;  %vm146_vm1 = vweird.f32 %v140_v54 }
  0xc9   :  { %v130_v3 = vmul.f32 %v129_v62, %v117_v35 }
  0xca   :  { %v153_v2 = vor.u32 1.1754944e-38, %v152_v61  ;;  %vm151_vm3 = vcmp.eq.f32.partialorder %v150_v0, 8.507059e+37 }
  0xce   :  { %v263_v57 = vpop.eup %262 }
  0xcf   :  { %v142_v59 = vmul.f32 %v263_v57, %v140_v54  ;;  %vm147_vm0 = vweird.f32 %v263_v57 }
  0xd0   :  { %vm148_vm2 = vmor %vm146_vm1, %vm147_vm0 }
  0xd1   :  { %v143_v60 = vsub.f32 1.0, %v142_v59 }
  0xd3   :  { %v144_v63 = vmul.f32 %v263_v57, %v143_v60 }
  0xd5   :  { %v145_v1 = vadd.f32 %v263_v57, %v144_v63 }
  0xd7   :  { %v149_v4 = vsel %vm148_vm2, %v263_v57, %v145_v1 }
  0xd8   :  { %v154_v5 = vsel %vm151_vm3, %v153_v2, %v149_v4 }
  0xd9   :  { %v155_v6 = vmul.f32 %v154_v5, %v130_v3 }
  0xdb   :  { %v251_v7 = vclamps-f32 %v155_v6, 1.0 }
  0xdd   :  { %v158_v9 = vadd.f32 1.0, %v251_v7 }
  0xdf   :  { %v159_v10 = vmul.f32 %v158_v9, %v116_v8 }
  0xe1   :  { %195 = vmatmul.f32.vlgmr.msra.gmra.mxu1 %v159_v10 }
 0x15e   :  { %v196_v12 = vpop.f32.mrf.mxu1 }
 0x15f   :  { %v197_v13 = vadd.f32 %v259_v11, %v196_v12 }
 0x161   :  { %v199_v14 = vadd.f32 %v197_v13, %v114_v33 }
 0x163   :  { %200 = vadd.xlane.f32.xlu0 %v199_v14 }
 0x1d6   :  { %v201_v17 = vpop.xlane.xlu0 %200 }
 0x1d7   :  { %v202_v18 = vmul.f32 0.015625, %v201_v17 }
 0x1d9   :  { %v206_v19 = vsub.f32 %v199_v14, %v202_v18 }
 0x1db   :  { %v207_v20 = vsel %vm205_vm4, %v206_v19, 0.0 }
 0x1dc   :  { %v208_v21 = vmul.f32 %v207_v20, %v207_v20 }
 0x1de   :  { %209 = vadd.xlane.f32.xlu0 %v208_v21 }
 0x251   :  { %v210_v22 = vpop.xlane.xlu0 %209 }
 0x252   :  { %v211_v23 = vmul.f32 0.015625, %v210_v22 }
 0x254   :  { %v212_v24 = vadd.f32 1e-05, %v211_v23 }
 0x256   :  { %264 = vrsqrt.f32 %v212_v24  ;;  %vm219_vm6 = vweird.f32 %v212_v24 }
 0x25c   :  { %v265_v25 = vpop.eup %264 }
 0x25d   :  { %v214_v26 = vmul.f32 %v265_v25, %v212_v24  ;;  %vm220_vm5 = vweird.f32 %v265_v25 }
 0x25e   :  { %vm221_vm7 = vmor %vm219_vm6, %vm220_vm5 }
 0x25f   :  { %v215_v27 = vmul.f32 %v265_v25, %v214_v26 }
 0x261   :  { %v216_v28 = vmul.f32 0.5, %v215_v27 }
 0x263   :  { %v217_v29 = vsub.f32 1.5, %v216_v28 }
 0x265   :  { %v218_v30 = vmul.f32 %v265_v25, %v217_v29 }
 0x267   :  { %v222_v32 = vsel %vm221_vm7, %v265_v25, %v218_v30 }
 0x268   :  { %v223_v33 = vmul.f32 %v222_v32, %v207_v20 }
 0x26a   :  { %v227_v35 = vmul.f32 %v260_v31, %v223_v33 }
 0x26c   :  { %v231_v36 = vadd.f32 %v261_v34, %v227_v35 }
 0x26e   :  { %232 = vst [vmem:[#allocation8] sm:$0xff] %v231_v36 }
 0x26f   :  { %243 = dma.vmem_to_hbm [thread:$0]  %s239_s22, 128, %s241_s25, [#allocation4]  }
 0x270   :  { %366 = dma.done.wait [#allocation4], 128  }
 0x271   :  { %367 = vsyncadd [#allocation4], 4294967168 }
 0x272   :  { %248 = vsyncpa [#allocation3], 1 }
 0x273   :  { %249 = vsyncpa [#allocation6], 1 }
 0x274   :  { %250 = vsyncpa [#allocation4], 1 }

</bundles_post_ra>
